<compile_context>
chip_gen: v6e
topology: v6e:2x2x1
jax: 0.10.0
libtpu: 0.0.40
codegen_flags: <defaults>
</compile_context>

<pallas_src>
import functools

import jax
import jax.numpy as jnp
from jax.experimental import pallas as pl
from jax.experimental.pallas import tpu as pltpu


def _round_up(x, m):
    return (x + m - 1) // m * m


def _mpoe_matmul_kernel(x_ref, w_ref, b_ref, o_ref):
    """One M-tile of the fused projection: O = X @ W + b (f32 accumulation)."""
    acc = jnp.dot(x_ref[...], w_ref[...], preferred_element_type=jnp.float32)
    o_ref[...] = (acc + b_ref[...].astype(jnp.float32)).astype(o_ref.dtype)


def _choose_block_rows(m_rows, k, n_pad, itemsize, block_rows=None,
                       budget_bytes=8 * 1024 * 1024, max_rows=1024):
    """Largest multiple-of-8 row tile <= max_rows whose double-buffered X/O working set
    fits a conservative VMEM byte budget (safe on v5e/v6e and v7x's smaller VMEM)."""
    if block_rows is not None:
        return _round_up(min(block_rows, _round_up(m_rows, 8)), 8)
    tm = _round_up(min(max_rows, _round_up(m_rows, 8)), 8)
    while tm > 8 and 2 * tm * (k + n_pad) * itemsize > budget_bytes:
        tm = max(8, (tm // 2) // 8 * 8)
    return tm


def _fused_matmul_bias(x2d, w_all, b_all, *, block_rows=None):
    """(M, K) @ (K, N_pad) + b, tiled over M with a 'parallel' grid axis."""
    m, k = x2d.shape
    k2, n_pad = w_all.shape
    assert k == k2 and n_pad % 128 == 0
    tm = _choose_block_rows(m, k, n_pad, x2d.dtype.itemsize, block_rows)
    m_pad = _round_up(m, tm)
    if m_pad != m:
        x2d = jnp.pad(x2d, ((0, m_pad - m), (0, 0)))
    grid = (m_pad // tm,)
    out = pl.pallas_call(
        _mpoe_matmul_kernel,
        out_shape=jax.ShapeDtypeStruct((m_pad, n_pad), x2d.dtype),
        grid=grid,
        in_specs=[
            pl.BlockSpec((tm, k), lambda i: (i, 0)),      # streamed X row tile
            pl.BlockSpec((k, n_pad), lambda i: (0, 0)),   # resident fused weight
            pl.BlockSpec((1, n_pad), lambda i: (0, 0)),   # resident fused bias
        ],
        out_specs=pl.BlockSpec((tm, n_pad), lambda i: (i, 0)),
        compiler_params=pltpu.CompilerParams(
            dimension_semantics=("parallel",),
            vmem_limit_bytes=32 * 1024 * 1024,
        ),
    )(x2d, w_all, b_all)
    return out, m


def prepare_params(weights, biases, patch_sizes, dtype=jnp.float32):
    """One-time fusion of the ConvTranspose1d bank parameters (hoisted out of the hot path).

    weights: list of (C_in, O, p) arrays (PyTorch ConvTranspose1d weight layout)
    biases : list of (O,) arrays
    Returns w_all (C_in, N_pad) and b_all (1, N_pad), with N = O*sum(patch_sizes)
    zero-padded to a multiple of 128 lanes for unmasked, lane-dense output stores.
    """
    c, o, _ = weights[0].shape
    w_segs = [jnp.asarray(w, dtype).reshape(c, o * p) for w, p in zip(weights, patch_sizes)]
    b_segs = [jnp.repeat(jnp.asarray(b, dtype)[:, None], p, axis=1).reshape(o * p)
              for b, p in zip(biases, patch_sizes)]
    w_all = jnp.concatenate(w_segs, axis=1)
    b_all = jnp.concatenate(b_segs, axis=0)
    n = w_all.shape[1]
    n_pad = _round_up(n, 128)
    if n_pad != n:
        w_all = jnp.pad(w_all, ((0, 0), (0, n_pad - n)))
        b_all = jnp.pad(b_all, ((0, n_pad - n),))
    return w_all, b_all.reshape(1, n_pad)


@functools.partial(jax.jit, static_argnames=("patch_sizes", "out_channels", "block_rows"))
def multi_patch_out_embedding(x, w_all, b_all, *, patch_sizes, out_channels, block_rows=None):
    """Forward pass.  x: (B, C_in, L) -> (B, O, L * sum(patch_sizes))."""
    bsz, c, l = x.shape
    o = out_channels

    # NCL -> (B*L, C): the input is the small tensor here, this transpose is negligible
    # relative to the output traffic.
    x2d = jnp.transpose(x, (0, 2, 1)).reshape(bsz * l, c)

    # Hot path: one tiled Pallas matmul + bias.
    y, m = _fused_matmul_bias(x2d, w_all, b_all, block_rows=block_rows)

    # Epilogue (same jit -> fused by XLA with the kernel's consumer): drop row/col padding,
    # split per patch, (B, L, O, p) -> (B, O, L*p), concat along length.
    y = y[:m].reshape(bsz, l, -1)
    outs = []
    off = 0
    for p in patch_sizes:
        seg = y[:, :, off:off + o * p]
        off += o * p
        seg = seg.reshape(bsz, l, o, p)
        seg = jnp.transpose(seg, (0, 2, 1, 3)).reshape(bsz, o, l * p)
        outs.append(seg)
    return jnp.concatenate(outs, axis=2)


def _reference(x, weights, biases, patch_sizes):
    """Pure-JAX reference of the ConvTranspose1d bank (for correctness check)."""
    outs = []
    for w, b, p in zip(weights, biases, patch_sizes):
        y = jnp.einsum("bcl,cok->bolk", x, w)          # y[b,o,l,k] = sum_c x[b,c,l] w[c,o,k]
        B, O, L, _ = y.shape
        y = y.reshape(B, O, L * p) + b[None, :, None]
        outs.append(y)
    return jnp.concatenate(outs, axis=2)


if __name__ == "__main__":
    patch_sizes = (1, 2, 4, 8, 16)
    in_channels = 8
    out_channels_per = 4
    B, L = 4, 100          # M = B*L = 400 rows -> multi-block grid + row padding exercised

    key = jax.random.PRNGKey(0)
    kx, *kws = jax.random.split(key, 1 + 2 * len(patch_sizes))
    x = jax.random.normal(kx, (B, in_channels, L), dtype=jnp.float32)

    weights, biases = [], []
    for i, p in enumerate(patch_sizes):
        fan = in_channels * p
        weights.append(
            jax.random.normal(kws[2 * i], (in_channels, out_channels_per, p), dtype=jnp.float32)
            / jnp.sqrt(jnp.float32(fan)))
        biases.append(
            jax.random.normal(kws[2 * i + 1], (out_channels_per,), dtype=jnp.float32) * 0.01)

    # One-time parameter fusion (outside the forward hot path).
    w_all, b_all = prepare_params(weights, biases, patch_sizes)

    ref = _reference(x, weights, biases, patch_sizes)
    expected_L = L * sum(patch_sizes)

    # Forced small tile -> 4 grid steps, last block row-padded.
    out = multi_patch_out_embedding(
        x, w_all, b_all,
        patch_sizes=patch_sizes, out_channels=out_channels_per, block_rows=128)
    out = jax.block_until_ready(out)
    assert out.shape == (B, out_channels_per, expected_L), out.shape
    assert jnp.allclose(out, ref, atol=1e-5, rtol=1e-5), "mismatch vs reference (tiled)"

    # Auto-selected tile path.
    out2 = jax.block_until_ready(
        multi_patch_out_embedding(
            x, w_all, b_all, patch_sizes=patch_sizes, out_channels=out_channels_per))
    assert jnp.allclose(out2, ref, atol=1e-5, rtol=1e-5), "mismatch vs reference (auto tile)"

    print("KERNEL_OK")
</pallas_src>

<mosaic_0001>
module attributes {stable_mosaic.version = 11 : i64} {
  func.func @_mpoe_matmul_kernel(%arg0: i32, %arg1: memref<128x8xf32, #tpu.memory_space<vmem>>, %arg2: memref<8x128xf32, #tpu.memory_space<vmem>>, %arg3: memref<1x128xf32, #tpu.memory_space<vmem>>, %arg4: memref<128x128xf32, #tpu.memory_space<vmem>>) attributes {dimension_semantics = [#tpu.dimension_semantics<parallel>], iteration_bounds = array<i64: 4>, scalar_prefetch = 0 : i64, scratch_operands = 0 : i64, tpu.core_type = #tpu.core_type<tc>, window_params = [{transform_indices = @transform_0, window_bounds = array<i64: 128, 8>}, {pipeline_mode = #tpu.pipeline_mode<synchronous>, transform_indices = @transform_1, window_bounds = array<i64: 8, 128>}, {pipeline_mode = #tpu.pipeline_mode<synchronous>, transform_indices = @transform_2, window_bounds = array<i64: 1, 128>}, {transform_indices = @transform_3, window_bounds = array<i64: 128, 128>}]} {
    %c0 = arith.constant 0 : index
    %c0_0 = arith.constant 0 : index
    %0 = vector.load %arg1[%c0, %c0_0] : memref<128x8xf32, #tpu.memory_space<vmem>>, vector<128x8xf32>
    %c0_1 = arith.constant 0 : index
    %c0_2 = arith.constant 0 : index
    %1 = vector.load %arg2[%c0_1, %c0_2] : memref<8x128xf32, #tpu.memory_space<vmem>>, vector<8x128xf32>
    %cst = arith.constant dense<0.000000e+00> : vector<128x128xf32>
    %2 = tpu.matmul %0, %1, %cst {dimension_numbers = #tpu.dot_dimension_numbers<[1], [0], [0], [1], [0, 0, 1, 1], [], []>} : vector<128x8xf32>, vector<8x128xf32>, vector<128x128xf32> -> vector<128x128xf32>
    %c0_3 = arith.constant 0 : index
    %c0_4 = arith.constant 0 : index
    %3 = vector.load %arg3[%c0_3, %c0_4] : memref<1x128xf32, #tpu.memory_space<vmem>>, vector<1x128xf32>
    %4 = vector.broadcast %3 : vector<1x128xf32> to vector<128x128xf32>
    %5 = arith.addf %2, %4 : vector<128x128xf32>
    %c0_5 = arith.constant 0 : index
    %c0_6 = arith.constant 0 : index
    %6 = vector.load %arg4[%c0_5, %c0_6] : memref<128x128xf32, #tpu.memory_space<vmem>>, vector<128x128xf32>
    tpu.vector_store %arg4[%c0_5, %c0_6], %5 {strides = array<i32>} : memref<128x128xf32, #tpu.memory_space<vmem>>, vector<128x128xf32>,
    return
  }
  func.func @transform_0(%arg0: i32) -> (i32, i32) {
    %c0_i32 = arith.constant 0 : i32
    %c0_i32_0 = arith.constant 0 : i32
    return %arg0, %c0_i32 : i32, i32
  }
  func.func @transform_1(%arg0: i32) -> (i32, i32) {
    %c0_i32 = arith.constant 0 : i32
    %c0_i32_0 = arith.constant 0 : i32
    %c0_i32_1 = arith.constant 0 : i32
    return %c0_i32, %c0_i32_0 : i32, i32
  }
  func.func @transform_2(%arg0: i32) -> (i32, i32) {
    %c0_i32 = arith.constant 0 : i32
    %c0_i32_0 = arith.constant 0 : i32
    %c0_i32_1 = arith.constant 0 : i32
    return %c0_i32, %c0_i32_0 : i32, i32
  }
  func.func @transform_3(%arg0: i32) -> (i32, i32) {
    %c0_i32 = arith.constant 0 : i32
    %c0_i32_0 = arith.constant 0 : i32
    return %arg0, %c0_i32 : i32, i32
  }
}

</mosaic_0001>

<bundles_post_ra>
// kernel: multi_patch_out_embedding.1
= control target key start
LH: loop header
LB: loop body
LE: loop exit
PB: predicated region body
PF: predicated region fallthrough
CT: control target
= control target key end

     0   :  { %s573_s12 = smov 0   ;;  %s637_s0 = inlined_call_operand.vmem [shape: f32[512,8], index: 0, kind: input, shape index: {}]   ;;  %s638_s1 = inlined_call_operand.vmem [shape: f32[8,128], index: 1, kind: input, shape index: {}]   ;;  %s639_s2 = inlined_call_operand.vmem [shape: f32[1,128], index: 2, kind: input, shape index: {}]   ;;  %s640_s3 = inlined_call_operand.vmem [shape: f32[512,128], index: 3, kind: output, shape index: {}]  }
   0x1 LB: > { %s464_s13 = sadd.s32 4294967295, %s551_s12   ;;  %p468_p0 = scmp.ge.s32.totalorder %s551_s12, 1  ;;  %s551_s12 = sphi %s573_s12, %s13_s12  }
   0x2   : > { %p138_p1 = scmp.lt.s32.totalorder %s551_s12, 5 }
   0x4   : > { %p139_p2 = pnand %p468_p0, %p138_p1 }
   0x5   : > { %s469_s16 = sshll.u32 (!%p139_p2), %s464_s13, 4 }
   0x6   : > { %142 = sbr.rel (%p139_p2) target bundleno = 227 (0xe3), region = 32  ;;  %p163_p3 = scmp.lt.s32.totalorder (!%p139_p2), %s469_s16, 63 }
   0xb   : > { %v190_v0 = vld [vmem:[%s638_s1] sm:$0xff]  ;;  %s642_s16 = smov (!%p163_p3, %s469_s16), 63  ;;  %vm198_vm0 = vcmask 64512  }
   0xc   : > { %509 = vmatprep.subr.mxu0 %v190_v0  ;;  %535 = vmatprep.subr.mxu1 %v190_v0  ;;  %s470_s17 = sshll.u32 %s642_s16, 3  ;;  %v473_v17 = vld [vmem:[%s639_s2] ss:$0 sm:$0xff] }
   0xd   : > { %510 = vmatpush3.msra.mxu0 %v190_v0  ;;  %536 = vmatpush3.msra.mxu1 %v190_v0  ;;  %s166_s20 = scalar_lea.vmem %s637_s0, %s470_s17  ;;  %s616_s25 = scalar_lea.vmem %s640_s3, %s470_s17 }
   0xe   : > { %v174_v1 = vld [vmem:[%s166_s20] sm:$0xff]  ;;  %v175_v3 = vld [vmem:[%s166_s20 + $0x8] sm:$0xff]  ;;  %v176_v5 = vld [vmem:[%s166_s20 + $0x10] sm:$0xff] }
   0xf   : > { %v182_v2 = vld [vmem:[%s166_s20 + $0x40] sm:$0xff]  ;;  %511 = vmatprep.mubr.msk.f32.mxu0 %vm198_vm0, %v174_v1  ;;  %v183_v4 = vld [vmem:[%s166_s20 + $0x48] sm:$0xff]  ;;  %v184_v6 = vld [vmem:[%s166_s20 + $0x50] sm:$0xff] }
  0x10   : > { %523 = vmatprep.mubr.msk.f32.mxu1 %vm198_vm0, %v182_v2  ;;  %512 = vmatmul.mubr.msk.f32.vlgmr.msra.gmra.mxu0 %vm198_vm0, %v175_v3  ;;  %v177_v7 = vld [vmem:[%s166_s20 + $0x18] sm:$0xff]  ;;  %v178_v9 = vld [vmem:[%s166_s20 + $0x20] sm:$0xff]  ;;  %v179_v11 = vld [vmem:[%s166_s20 + $0x28] sm:$0xff] }
  0x11   : > { %524 = vmatmul.mubr.msk.f32.vlgmr.msra.gmra.mxu1 %vm198_vm0, %v183_v4  ;;  %514 = vmatprep.mubr.msk.f32.mxu0 %vm198_vm0, %v176_v5  ;;  %v185_v8 = vld [vmem:[%s166_s20 + $0x58] sm:$0xff]  ;;  %v186_v10 = vld [vmem:[%s166_s20 + $0x60] sm:$0xff]  ;;  %v187_v12 = vld [vmem:[%s166_s20 + $0x68] sm:$0xff] }
  0x12   : > { %526 = vmatprep.mubr.msk.f32.mxu1 %vm198_vm0, %v184_v6  ;;  %v180_v13 = vld [vmem:[%s166_s20 + $0x30] sm:$0xff]  ;;  %v181_v15 = vld [vmem:[%s166_s20 + $0x38] sm:$0xff] }
  0x13   : > { %v188_v14 = vld [vmem:[%s166_s20 + $0x70] sm:$0xff]  ;;  %v189_v16 = vld [vmem:[%s166_s20 + $0x78] sm:$0xff] }
  0x14   : > { %515 = vmatmul.mubr.msk.f32.gmra.mxu0 %vm198_vm0, %v177_v7 }
  0x15   : > { %527 = vmatmul.mubr.msk.f32.gmra.mxu1 %vm198_vm0, %v185_v8  ;;  %517 = vmatprep.mubr.msk.f32.mxu0 %vm198_vm0, %v178_v9 }
  0x16   : > { %529 = vmatprep.mubr.msk.f32.mxu1 %vm198_vm0, %v186_v10 }
  0x18   : > { %518 = vmatmul.mubr.msk.f32.gmra.mxu0 %vm198_vm0, %v179_v11 }
  0x19   : > { %530 = vmatmul.mubr.msk.f32.gmra.mxu1 %vm198_vm0, %v187_v12  ;;  %520 = vmatprep.mubr.msk.f32.mxu0 %vm198_vm0, %v180_v13 }
  0x1a   : > { %532 = vmatprep.mubr.msk.f32.mxu1 %vm198_vm0, %v188_v14 }
  0x1c   : > { %521 = vmatmul.mubr.msk.f32.gmra.mxu0 %vm198_vm0, %v181_v15 }
  0x1d   : > { %533 = vmatmul.mubr.msk.f32.gmra.mxu1 %vm198_vm0, %v189_v16 }
  0xd0   : > { %v513_v18 = vpop.f32.mrf.mxu0 }
  0xd1   : > { %v525_v19 = vpop.f32.mrf.mxu1  ;;  %v319_v20 = vadd.f32 %v513_v18, %v473_v17 }
  0xd2   : > { %v359_v21 = vadd.f32 %v525_v19, %v473_v17  ;;  %v313_v22 = vpop.f32.mrf.mxu0 }
  0xd3   : > { %v353_v23 = vpop.f32.mrf.mxu1  ;;  %393 = vst [vmem:[%s616_s25 + $0x8] sm:$0xff] %v319_v20  ;;  %v314_v24 = vadd.f32 %v473_v17, %v313_v22 }
  0xd4   : > { %401 = vst [vmem:[%s616_s25 + $0x48] sm:$0xff] %v359_v21  ;;  %v354_v25 = vadd.f32 %v473_v17, %v353_v23  ;;  %v516_v26 = vpop.f32.mrf.mxu0 }
  0xd5   : > { %v528_v27 = vpop.f32.mrf.mxu1  ;;  %392 = vst [vmem:[%s616_s25] sm:$0xff] %v314_v24  ;;  %v329_v28 = vadd.f32 %v516_v26, %v473_v17 }
  0xd6   : > { %400 = vst [vmem:[%s616_s25 + $0x40] sm:$0xff] %v354_v25  ;;  %v369_v29 = vadd.f32 %v528_v27, %v473_v17  ;;  %v323_v30 = vpop.f32.mrf.mxu0 }
  0xd7   : > { %v363_v31 = vpop.f32.mrf.mxu1  ;;  %395 = vst [vmem:[%s616_s25 + $0x18] sm:$0xff] %v329_v28  ;;  %v324_v32 = vadd.f32 %v473_v17, %v323_v30 }
  0xd8   : > { %403 = vst [vmem:[%s616_s25 + $0x58] sm:$0xff] %v369_v29  ;;  %v364_v33 = vadd.f32 %v473_v17, %v363_v31  ;;  %v519_v34 = vpop.f32.mrf.mxu0 }
  0xd9   : > { %v531_v35 = vpop.f32.mrf.mxu1  ;;  %394 = vst [vmem:[%s616_s25 + $0x10] sm:$0xff] %v324_v32  ;;  %v339_v36 = vadd.f32 %v519_v34, %v473_v17 }
  0xda   : > { %402 = vst [vmem:[%s616_s25 + $0x50] sm:$0xff] %v364_v33  ;;  %v379_v37 = vadd.f32 %v531_v35, %v473_v17  ;;  %v333_v38 = vpop.f32.mrf.mxu0 }
  0xdb   : > { %v373_v39 = vpop.f32.mrf.mxu1  ;;  %397 = vst [vmem:[%s616_s25 + $0x28] sm:$0xff] %v339_v36  ;;  %v334_v40 = vadd.f32 %v473_v17, %v333_v38 }
  0xdc   : > { %405 = vst [vmem:[%s616_s25 + $0x68] sm:$0xff] %v379_v37  ;;  %v374_v41 = vadd.f32 %v473_v17, %v373_v39  ;;  %v522_v42 = vpop.f32.mrf.mxu0 }
  0xdd   : > { %v534_v43 = vpop.f32.mrf.mxu1  ;;  %396 = vst [vmem:[%s616_s25 + $0x20] sm:$0xff] %v334_v40  ;;  %v349_v44 = vadd.f32 %v522_v42, %v473_v17 }
  0xde   : > { %404 = vst [vmem:[%s616_s25 + $0x60] sm:$0xff] %v374_v41  ;;  %v389_v45 = vadd.f32 %v534_v43, %v473_v17  ;;  %v343_v46 = vpop.f32.mrf.mxu0 }
  0xdf   : > { %v383_v47 = vpop.f32.mrf.mxu1  ;;  %399 = vst [vmem:[%s616_s25 + $0x38] sm:$0xff] %v349_v44  ;;  %v344_v48 = vadd.f32 %v473_v17, %v343_v46 }
  0xe0   : > { %407 = vst [vmem:[%s616_s25 + $0x78] sm:$0xff] %v389_v45  ;;  %v384_v49 = vadd.f32 %v473_v17, %v383_v47 }
  0xe1   : > { %398 = vst [vmem:[%s616_s25 + $0x30] sm:$0xff] %v344_v48 }
  0xe2   : > { %406 = vst [vmem:[%s616_s25 + $0x70] sm:$0xff] %v384_v49 }
  0xe3 PF: > { %s13_s12 = sadd.s32 1, %s551_s12  }
  0xe4   : > { %p10_p4 = scmp.ge.s32.totalorder %s13_s12, 6  }
  0xe6   :  { %12 = sbr.rel (!%p10_p4) target bundleno = 1 (0x1), region = 62 }

</bundles_post_ra>
